<compile_context>
chip_gen: v5e
topology: v5e:2x2
jax: 0.10.0
libtpu: 0.0.40
codegen_flags: <defaults>
</compile_context>

<pallas_src>
import functools

import jax
import jax.numpy as jnp
from jax.experimental import pallas as pl
from jax.experimental.pallas import tpu as pltpu


def _round_up(n, m):
    return ((n + m - 1) // m) * m


def _potts_kernel(x_ref, j_ref, b_ref, o_ref, *, beta):
    """One batch tile of the Potts energy.

    x_ref : VMEM (block_b, D)  flattened states (streamed per grid step)
    j_ref : VMEM (D, D)        J_mat, resident across grid steps
    b_ref : VMEM (1, D)        flattened bias, resident across grid steps
    o_ref : VMEM (block_b, 1)  per-row energy
    """
    x = x_ref[...]
    # Jx_flat[b, p] = sum_q x[b, q] * J_mat[q, p]   (MXU, f32 accumulate)
    jx = jnp.dot(x, j_ref[...], preferred_element_type=jnp.float32)
    # out[b] = sum_p x[b, p] * (beta * Jx_flat[b, p] + bias_flat[p])
    z = x * (beta * jx + b_ref[...])
    o_ref[...] = jnp.sum(z, axis=-1, keepdims=True)


def dense_potts_forward(x, J, bias, beta=1.0, *, block_b=128, interpret=False):
    """Pallas TPU forward for DensePottsModel.

    x    : (B, dim, n_out)
    J    : (dim, dim, n_out, n_out)
    bias : (dim, n_out)
    Returns (B,) float32: beta * x^T J x + bias . x   (per batch row).
    """
    B, dim, n_out = x.shape
    assert J.shape == (dim, dim, n_out, n_out)
    assert bias.shape == (dim, n_out)
    D = dim * n_out

    x_flat = x.reshape(B, D).astype(jnp.float32)
    # J_mat[(j,l),(i,k)] = J[i,j,k,l]  =>  (X @ J_mat) == einsum('ijkl,bjl->bik').reshape(B, D)
    j_mat = jnp.transpose(J, (1, 3, 0, 2)).reshape(D, D).astype(jnp.float32)
    b_row = bias.reshape(1, D).astype(jnp.float32)

    # Batch tile: multiple of 8 (sublane) rows; pad batch with zero rows
    # (zero rows contribute exactly 0 energy and are sliced off below).
    block_b = _round_up(max(8, min(int(block_b), B)), 8)
    b_pad = _round_up(B, block_b)
    if b_pad != B:
        x_flat = jnp.pad(x_flat, ((0, b_pad - B), (0, 0)))
    grid = (b_pad // block_b,)

    kernel = functools.partial(_potts_kernel, beta=float(beta))
    out = pl.pallas_call(
        kernel,
        out_shape=jax.ShapeDtypeStruct((b_pad, 1), jnp.float32),
        grid=grid,
        in_specs=[
            pl.BlockSpec((block_b, D), lambda i: (i, 0)),   # X: streamed tiles
            pl.BlockSpec((D, D), lambda i: (0, 0)),          # J_mat: resident
            pl.BlockSpec((1, D), lambda i: (0, 0)),          # bias: resident
        ],
        out_specs=pl.BlockSpec((block_b, 1), lambda i: (i, 0)),
        compiler_params=pltpu.CompilerParams(
            dimension_semantics=("parallel",),
        ),
        interpret=interpret,
    )(x_flat, j_mat, b_row)
    return out[:B, 0]


def ref_forward(x, J, bias, beta=1.0):
    """Pure-JAX reference mirroring the PyTorch forward."""
    hi = jax.lax.Precision.HIGHEST
    Jx = jnp.einsum('ijkl,bjl->bik', J, x, precision=hi)
    xJx = jnp.einsum('bik,bik->b', Jx, x, precision=hi)
    b = (bias[None] * x).sum(-1).sum(-1)
    return xJx * beta + b


# TODO(synk): init_dist / init_sample (OneHotCategorical sampling) are host-side
# distribution utilities outside forward(); they are not Pallas kernels — the
# test below just builds one-hot samples in plain JAX.

if __name__ == "__main__":
    key = jax.random.PRNGKey(0)
    k_j, k_x1, k_j2, k_b2, k_x2 = jax.random.split(key, 5)

    # --- DensePottsModel(dim=8, n_out=20, init_bias=0.25), one-hot batch ---
    dim, n_out, B = 8, 20, 200
    J = jax.random.normal(k_j, (dim, dim, n_out, n_out), dtype=jnp.float32) * 0.01
    bias = jnp.ones((dim, n_out), dtype=jnp.float32) * 0.25
    idx = jax.random.randint(k_x1, (B, dim), 0, n_out)
    x = jax.nn.one_hot(idx, n_out, dtype=jnp.float32)

    out = dense_potts_forward(x, J, bias, beta=0.7, block_b=64)
    out = jax.block_until_ready(out)
    ref = ref_forward(x, J, bias, beta=0.7)
    assert out.shape == (B,)
    assert jnp.allclose(out, ref, atol=1e-3, rtol=1e-3), \
        float(jnp.max(jnp.abs(out - ref)))

    # --- second config: smaller dims, dense (non-one-hot) x, ragged batch ---
    dim2, n_out2, B2 = 4, 12, 10
    J2 = jax.random.normal(k_j2, (dim2, dim2, n_out2, n_out2), dtype=jnp.float32) * 0.01
    bias2 = jax.random.normal(k_b2, (dim2, n_out2), dtype=jnp.float32) * 0.1
    x2 = jax.random.uniform(k_x2, (B2, dim2, n_out2), dtype=jnp.float32)

    out2 = dense_potts_forward(x2, J2, bias2, beta=1.0, block_b=128)
    out2 = jax.block_until_ready(out2)
    ref2 = ref_forward(x2, J2, bias2, beta=1.0)
    assert out2.shape == (B2,)
    assert jnp.allclose(out2, ref2, atol=1e-3, rtol=1e-3), \
        float(jnp.max(jnp.abs(out2 - ref2)))

    print("KERNEL_OK")
</pallas_src>

<mosaic_0001>
module attributes {stable_mosaic.version = 11 : i64} {
  func.func @_potts_kernel(%arg0: i32, %arg1: memref<64x160xf32, #tpu.memory_space<vmem>>, %arg2: memref<160x160xf32, #tpu.memory_space<vmem>>, %arg3: memref<1x160xf32, #tpu.memory_space<vmem>>, %arg4: memref<64x1xf32, #tpu.memory_space<vmem>>) attributes {dimension_semantics = [#tpu.dimension_semantics<parallel>], iteration_bounds = array<i64: 4>, scalar_prefetch = 0 : i64, scratch_operands = 0 : i64, tpu.core_type = #tpu.core_type<tc>, window_params = [{transform_indices = @transform_0, window_bounds = array<i64: 64, 160>}, {pipeline_mode = #tpu.pipeline_mode<synchronous>, transform_indices = @transform_1, window_bounds = array<i64: 160, 160>}, {pipeline_mode = #tpu.pipeline_mode<synchronous>, transform_indices = @transform_2, window_bounds = array<i64: 1, 160>}, {transform_indices = @transform_3, window_bounds = array<i64: 64, 1>}]} {
    %c0 = arith.constant 0 : index
    %c0_0 = arith.constant 0 : index
    %0 = vector.load %arg1[%c0, %c0_0] : memref<64x160xf32, #tpu.memory_space<vmem>>, vector<64x160xf32>
    %c0_1 = arith.constant 0 : index
    %c0_2 = arith.constant 0 : index
    %1 = vector.load %arg2[%c0_1, %c0_2] : memref<160x160xf32, #tpu.memory_space<vmem>>, vector<160x160xf32>
    %cst = arith.constant dense<0.000000e+00> : vector<64x160xf32>
    %2 = tpu.matmul %0, %1, %cst {dimension_numbers = #tpu.dot_dimension_numbers<[1], [0], [0], [1], [0, 0, 1, 1], [], []>} : vector<64x160xf32>, vector<160x160xf32>, vector<64x160xf32> -> vector<64x160xf32>
    %cst_3 = arith.constant 0.699999988 : f32
    %3 = vector.broadcast %cst_3 : f32 to vector<64x160xf32>
    %4 = arith.mulf %3, %2 : vector<64x160xf32>
    %c0_4 = arith.constant 0 : index
    %c0_5 = arith.constant 0 : index
    %5 = vector.load %arg3[%c0_4, %c0_5] : memref<1x160xf32, #tpu.memory_space<vmem>>, vector<1x160xf32>
    %6 = vector.broadcast %5 : vector<1x160xf32> to vector<64x160xf32>
    %7 = arith.addf %4, %6 : vector<64x160xf32>
    %8 = arith.mulf %0, %7 : vector<64x160xf32>
    %cst_6 = arith.constant dense<0.000000e+00> : vector<64xf32>
    %9 = vector.multi_reduction <add>, %8, %cst_6 [1] : vector<64x160xf32> to vector<64xf32>
    %10 = vector.shape_cast %9 : vector<64xf32> to vector<64x1xf32>
    %c0_7 = arith.constant 0 : index
    %c0_8 = arith.constant 0 : index
    %11 = vector.load %arg4[%c0_7, %c0_8] : memref<64x1xf32, #tpu.memory_space<vmem>>, vector<64x1xf32>
    tpu.vector_store %arg4[%c0_7, %c0_8], %10 {strides = array<i32>} : memref<64x1xf32, #tpu.memory_space<vmem>>, vector<64x1xf32>,
    return
  }
  func.func @transform_0(%arg0: i32) -> (i32, i32) {
    %c0_i32 = arith.constant 0 : i32
    %c0_i32_0 = arith.constant 0 : i32
    return %arg0, %c0_i32 : i32, i32
  }
  func.func @transform_1(%arg0: i32) -> (i32, i32) {
    %c0_i32 = arith.constant 0 : i32
    %c0_i32_0 = arith.constant 0 : i32
    %c0_i32_1 = arith.constant 0 : i32
    return %c0_i32, %c0_i32_0 : i32, i32
  }
  func.func @transform_2(%arg0: i32) -> (i32, i32) {
    %c0_i32 = arith.constant 0 : i32
    %c0_i32_0 = arith.constant 0 : i32
    %c0_i32_1 = arith.constant 0 : i32
    return %c0_i32, %c0_i32_0 : i32, i32
  }
  func.func @transform_3(%arg0: i32) -> (i32, i32) {
    %c0_i32 = arith.constant 0 : i32
    %c0_i32_0 = arith.constant 0 : i32
    return %arg0, %c0_i32 : i32, i32
  }
}

</mosaic_0001>

<bundles_post_ra>
// kernel: tpu_custom_call.1
= control target key start
LH: loop header
LB: loop body
LE: loop exit
PB: predicated region body
PF: predicated region fallthrough
CT: control target
= control target key end

     0   :  { %s638_s12 = smov 0   ;;  %s932_s0 = inlined_call_operand.vmem [shape: f32[256,160], index: 0, kind: input, shape index: {}]   ;;  %s933_s1 = inlined_call_operand.vmem [shape: f32[160,160], index: 1, kind: input, shape index: {}]   ;;  %s934_s2 = inlined_call_operand.vmem [shape: f32[1,160], index: 2, kind: input, shape index: {}]   ;;  %s935_s3 = inlined_call_operand.vmem [shape: f32[256,1], index: 3, kind: output, shape index: {}]  }
   0x1 LB: > { %s573_s13 = sadd.s32 4294967295, %s616_s12   ;;  %p577_p0 = scmp.ge.s32.totalorder %s616_s12, 1  ;;  %s616_s12 = sphi %s638_s12, %s13_s12  }
   0x2   : > { %p139_p1 = scmp.lt.s32.totalorder %s616_s12, 5 }
   0x4   : > { %p140_p2 = pnand %p577_p0, %p139_p1 }
   0x5   : > { %s578_s18 = sshll.u32 (!%p140_p2), %s573_s13, 3 }
   0x6   : > { %143 = sbr.rel (%p140_p2) target bundleno = 359 (0x167), region = 32  ;;  %p165_p3 = scmp.lt.s32.totalorder (!%p140_p2), %s578_s18, 31 }
   0xb   : > { %v224_v0 = vld [vmem:[%s933_s1 + $0xf8] sm:$0xff]  ;;  %v222_v1 = vld [vmem:[%s933_s1 + $0xe8] sm:$0xff]  ;;  %v223_v2 = vld [vmem:[%s933_s1 + $0xf0] sm:$0xff]  ;;  %s937_s18 = smov (!%p165_p3, %s578_s18), 31  ;;  %vm233_vm0 = vcmask 261120   ;;  %vm508_vm1 = vcmask 7168  }
   0xc   : > { %340 = vmatpush.msra.mxu2 %v224_v0  ;;  %v220_v3 = vld [vmem:[%s933_s1 + $0xd8] sm:$0xff]  ;;  %258 = vmatpush.msra.mxu0 %v223_v2  ;;  %v221_v4 = vld [vmem:[%s933_s1 + $0xe0] sm:$0xff]  ;;  %v219_v5 = vld [vmem:[%s933_s1 + $0xd0] sm:$0xff]  ;;  %s601_s6 = sshll.u32 %s937_s18, 4 }
   0xd   : > { %v218_v6 = vld [vmem:[%s933_s1 + $0xc8] sm:$0xff]  ;;  %v217_v7 = vld [vmem:[%s933_s1 + $0xc0] sm:$0xff]  ;;  %v216_v8 = vld [vmem:[%s933_s1 + $0xb8] sm:$0xff]  ;;  %s697_s23 = scalar_lea.vmem %s932_s0, %s601_s6 }
   0xe   : > { %341 = vmatpush.msra.mxu2 %v222_v1  ;;  %259 = vmatpush.msra.mxu0 %v221_v4  ;;  %v215_v9 = vld [vmem:[%s933_s1 + $0xb0] sm:$0xff]  ;;  %v232_v10 = vld [vmem:[%s933_s1 + $0x138] sm:$0xff]  ;;  %v214_v11 = vld [vmem:[%s933_s1 + $0xa8] sm:$0xff] }
   0xf   : > { %393 = vmatpush.msra.mxu3 %v232_v10  ;;  %v230_v12 = vld [vmem:[%s933_s1 + $0x128] sm:$0xff]  ;;  %v213_v13 = vld [vmem:[%s933_s1 + $0xa0] sm:$0xff]  ;;  %v228_v14 = vld [vmem:[%s933_s1 + $0x118] sm:$0xff] }
  0x10   : > { %342 = vmatpush.msra.mxu2 %v220_v3  ;;  %260 = vmatpush.msra.mxu0 %v219_v5  ;;  %v212_v15 = vld [vmem:[%s933_s1 + $0x98] sm:$0xff]  ;;  %v211_v16 = vld [vmem:[%s933_s1 + $0x90] sm:$0xff]  ;;  %v226_v17 = vld [vmem:[%s933_s1 + $0x108] sm:$0xff] }
  0x11   : > { %394 = vmatpush.msra.mxu3 %v230_v12  ;;  %v231_v18 = vld [vmem:[%s933_s1 + $0x130] sm:$0xff]  ;;  %v210_v19 = vld [vmem:[%s933_s1 + $0x88] sm:$0xff]  ;;  %v209_v21 = vld [vmem:[%s933_s1 + $0x80] sm:$0xff] }
  0x12   : > { %343 = vmatpush.msra.mxu2 %v218_v6  ;;  %261 = vmatpush.msra.mxu0 %v217_v7  ;;  %v715_v20 = vld [vmem:[%s697_s23 + $0x8] sm:$0xff]  ;;  %v229_v22 = vld [vmem:[%s933_s1 + $0x120] sm:$0xff]  ;;  %v208_v23 = vld [vmem:[%s933_s1 + $0x78] sm:$0xff] }
  0x13   : > { %395 = vmatpush.msra.mxu3 %v228_v14  ;;  %311 = vmatpush.msra.mxu1 %v231_v18  ;;  %v207_v24 = vld [vmem:[%s933_s1 + $0x70] sm:$0xff]  ;;  %v206_v26 = vld [vmem:[%s933_s1 + $0x68] sm:$0xff]  ;;  %v205_v27 = vld [vmem:[%s933_s1 + $0x60] sm:$0xff] }
  0x14   : > { %344 = vmatpush.msra.mxu2 %v216_v8  ;;  %262 = vmatpush.msra.mxu0 %v215_v9  ;;  %v227_v25 = vld [vmem:[%s933_s1 + $0x110] sm:$0xff]  ;;  %v225_v28 = vld [vmem:[%s933_s1 + $0x100] sm:$0xff]  ;;  %v204_v29 = vld [vmem:[%s933_s1 + $0x58] sm:$0xff] }
  0x15   : > { %396 = vmatpush.msra.mxu3 %v226_v17  ;;  %312 = vmatpush.msra.mxu1 %v229_v22  ;;  %v203_v30 = vld [vmem:[%s933_s1 + $0x50] sm:$0xff]  ;;  %v202_v31 = vld [vmem:[%s933_s1 + $0x48] sm:$0xff]  ;;  %v753_v32 = vld [vmem:[%s697_s23 + $0x18] sm:$0xff] }
  0x16   : > { %345 = vmatpush.msra.mxu2 %v214_v11  ;;  %263 = vmatpush.msra.mxu0 %v213_v13  ;;  %v201_v33 = vld [vmem:[%s933_s1 + $0x40] sm:$0xff]  ;;  %v200_v34 = vld [vmem:[%s933_s1 + $0x38] sm:$0xff]  ;;  %v199_v35 = vld [vmem:[%s933_s1 + $0x30] sm:$0xff] }
  0x17   : > { %591 = vmatmul.msk.f32.vlgmr.msra.gmra.mxu3 %vm233_vm0, %v715_v20  ;;  %313 = vmatpush.msra.mxu1 %v227_v25  ;;  %v198_v36 = vld [vmem:[%s933_s1 + $0x28] sm:$0xff]  ;;  %v197_v37 = vld [vmem:[%s933_s1 + $0x20] sm:$0xff]  ;;  %v196_v38 = vld [vmem:[%s933_s1 + $0x18] sm:$0xff] }
  0x18   : > { %346 = vmatpush.msra.mxu2 %v212_v15  ;;  %264 = vmatpush.msra.mxu0 %v211_v16  ;;  %v195_v39 = vld [vmem:[%s933_s1 + $0x10] sm:$0xff]  ;;  %v194_v40 = vld [vmem:[%s933_s1 + $0x8] sm:$0xff]  ;;  %v787_v42 = vld [vmem:[%s697_s23] sm:$0xff] }
  0x19   : > { %314 = vmatpush.msra.mxu1 %v225_v28  ;;  %v784_v41 = vld [vmem:[%s697_s23 + $0x28] sm:$0xff]  ;;  %v193_v43 = vld [vmem:[%s933_s1] sm:$0xff]  ;;  %v799_v44 = vld [vmem:[%s697_s23 + $0x38] sm:$0xff] }
  0x1a   : > { %347 = vmatpush.msra.mxu2 %v210_v19  ;;  %265 = vmatpush.msra.mxu0 %v209_v21  ;;  %v802_v45 = vld [vmem:[%s697_s23 + $0x10] sm:$0xff]  ;;  %v811_v46 = vld [vmem:[%s697_s23 + $0x48] sm:$0xff]  ;;  %v814_v47 = vld [vmem:[%s697_s23 + $0x20] sm:$0xff] }
  0x1b   : > { %583 = vmatmul.msk.f32.vlgmr.msra.gmra.mxu1 %vm233_vm0, %v715_v20  ;;  %v823_v48 = vld [vmem:[%s697_s23 + $0x58] sm:$0xff]  ;;  %v826_v49 = vld [vmem:[%s697_s23 + $0x30] sm:$0xff]  ;;  %v835_v50 = vld [vmem:[%s697_s23 + $0x68] sm:$0xff] }
  0x1c   : > { %348 = vmatpush.msra.mxu2 %v208_v23  ;;  %266 = vmatpush.msra.mxu0 %v207_v24  ;;  %v838_v51 = vld [vmem:[%s697_s23 + $0x40] sm:$0xff]  ;;  %v847_v52 = vld [vmem:[%s697_s23 + $0x78] sm:$0xff]  ;;  %v850_v53 = vld [vmem:[%s697_s23 + $0x50] sm:$0xff] }
  0x1d   : > { %v859_v54 = vld [vmem:[%s697_s23 + $0x60] sm:$0xff]  ;;  %v866_v55 = vld [vmem:[%s697_s23 + $0x70] sm:$0xff]  ;;  %s582_s23 = sshll.u32 %s937_s18, 3 }
  0x1e   : > { %349 = vmatpush.msra.mxu2 %v206_v26  ;;  %267 = vmatpush.msra.mxu0 %v205_v27  ;;  %v438_v60 = vld [vmem:[%s934_s2] sm:$0x3]  ;;  %s175_s30 = scalar_lea.vmem %s935_s3, %s582_s23 }
  0x1f   : > { %592 = vmatmul.msk.f32.gmra.mxu3 %vm233_vm0, %v753_v32  ;;  %v873_v0 = vperm.slane %v438_v60, 0  ;;  %v875_v4 = vperm.slane %v438_v60, 1 }
  0x20   : > { %350 = vmatpush.msra.mxu2 %v204_v29  ;;  %268 = vmatpush.msra.mxu0 %v203_v30 }
  0x22   : > { %351 = vmatpush.msra.mxu2 %v202_v31  ;;  %269 = vmatpush.msra.mxu0 %v201_v33 }
  0x23   : > { %584 = vmatmul.msk.f32.gmra.mxu1 %vm233_vm0, %v753_v32 }
  0x24   : > { %352 = vmatpush.msra.mxu2 %v200_v34  ;;  %270 = vmatpush.msra.mxu0 %v199_v35 }
  0x26   : > { %353 = vmatpush.msra.mxu2 %v198_v36  ;;  %271 = vmatpush.msra.mxu0 %v197_v37 }
  0x27   : > { %593 = vmatmul.msk.f32.gmra.mxu3 %vm233_vm0, %v784_v41 }
  0x28   : > { %354 = vmatpush.msra.mxu2 %v196_v38  ;;  %272 = vmatpush.msra.mxu0 %v195_v39 }
  0x2a   : > { %355 = vmatpush.msra.mxu2 %v194_v40  ;;  %273 = vmatpush.msra.mxu0 %v193_v43 }
  0x2b   : > { %356 = vmatmul.f32.vlgmr.msra.gmra.mxu2 %v787_v42  ;;  %274 = vmatmul.f32.vlgmr.msra.gmra.mxu0 %v787_v42 }
  0x2c   : > { %585 = vmatmul.msk.f32.gmra.mxu1 %vm233_vm0, %v784_v41 }
  0x2f   : > { %594 = vmatmul.msk.f32.gmra.mxu3 %vm233_vm0, %v799_v44 }
  0x33   : > { %359 = vmatmul.f32.gmra.mxu2 %v802_v45  ;;  %277 = vmatmul.f32.gmra.mxu0 %v802_v45 }
  0x34   : > { %586 = vmatmul.msk.f32.gmra.mxu1 %vm233_vm0, %v799_v44 }
  0x37   : > { %595 = vmatmul.msk.f32.gmra.mxu3 %vm233_vm0, %v811_v46 }
  0x3b   : > { %362 = vmatmul.f32.gmra.mxu2 %v814_v47  ;;  %280 = vmatmul.f32.gmra.mxu0 %v814_v47 }
  0x3c   : > { %587 = vmatmul.msk.f32.gmra.mxu1 %vm233_vm0, %v811_v46 }
  0x3f   : > { %596 = vmatmul.msk.f32.gmra.mxu3 %vm233_vm0, %v823_v48 }
  0x43   : > { %365 = vmatmul.f32.gmra.mxu2 %v826_v49  ;;  %283 = vmatmul.f32.gmra.mxu0 %v826_v49 }
  0x44   : > { %588 = vmatmul.msk.f32.gmra.mxu1 %vm233_vm0, %v823_v48 }
  0x47   : > { %597 = vmatmul.msk.f32.gmra.mxu3 %vm233_vm0, %v835_v50 }
  0x4b   : > { %368 = vmatmul.f32.gmra.mxu2 %v838_v51  ;;  %286 = vmatmul.f32.gmra.mxu0 %v838_v51 }
  0x4c   : > { %589 = vmatmul.msk.f32.gmra.mxu1 %vm233_vm0, %v835_v50 }
  0x4f   : > { %598 = vmatmul.msk.f32.gmra.mxu3 %vm233_vm0, %v847_v52 }
  0x53   : > { %371 = vmatmul.f32.gmra.mxu2 %v850_v53  ;;  %289 = vmatmul.f32.gmra.mxu0 %v850_v53 }
  0x54   : > { %590 = vmatmul.msk.f32.gmra.mxu1 %vm233_vm0, %v847_v52 }
  0x5b   : > { %374 = vmatmul.f32.gmra.mxu2 %v859_v54  ;;  %292 = vmatmul.f32.gmra.mxu0 %v859_v54 }
  0x63   : > { %377 = vmatmul.f32.gmra.mxu2 %v866_v55  ;;  %295 = vmatmul.f32.gmra.mxu0 %v866_v55 }
  0x98   : > { %v316_v56 = vpop.f32.mrf.mxu1 }
  0x9a   : > { %v398_v57 = vpop.f32.mrf.mxu3 }
  0xa0   : > { %v319_v58 = vpop.f32.mrf.mxu1 }
  0xa2   : > { %v401_v59 = vpop.f32.mrf.mxu3 }
  0xa8   : > { %v275_v61 = vpop.f32.mrf.mxu0 }
  0xa9   : > { %v317_v62 = vadd.f32 %v316_v56, %v275_v61  ;;  %v322_v1 = vpop.f32.mrf.mxu1 }
  0xaa   : > { %v404_v9 = vpop.f32.mrf.mxu3 }
  0xab   : > { %v422_v63 = vmul.f32 0.7, %v317_v62 }
  0xad   : > { %v444_v5 = vadd.f32 %v873_v0, %v422_v63 }
  0xae   : > { %v357_v2 = vpop.f32.mrf.mxu2 }
  0xaf   : > { %v399_v3 = vadd.f32 %v398_v57, %v357_v2  ;;  %v460_v12 = vmul.f32 %v444_v5, %v787_v42 }
  0xb0   : > { %v278_v7 = vpop.f32.mrf.mxu0 }
  0xb1   : > { %v423_v6 = vmul.f32 0.7, %v399_v3  ;;  %v320_v8 = vadd.f32 %v319_v58, %v278_v7  ;;  %v325_v17 = vpop.f32.mrf.mxu1 }
  0xb2   : > { %v407_v27 = vpop.f32.mrf.mxu3 }
  0xb3   : > { %v445_v10 = vadd.f32 %v875_v4, %v423_v6  ;;  %v424_v11 = vmul.f32 0.7, %v320_v8 }
  0xb5   : > { %v461_v13 = vmul.f32 %v445_v10, %v715_v20  ;;  %v446_v18 = vadd.f32 %v873_v0, %v424_v11 }
  0xb6   : > { %v360_v14 = vpop.f32.mrf.mxu2 }
  0xb7   : > { %v402_v15 = vadd.f32 %v401_v59, %v360_v14  ;;  %v476_v16 = vsel %vm233_vm0, %v461_v13, 0.0  ;;  %v462_v26 = vmul.f32 %v446_v18, %v802_v45 }
  0xb8   : > { %v477_v19 = vadd.f32 %v476_v16, %v460_v12  ;;  %v281_v22 = vpop.f32.mrf.mxu0 }
  0xb9   : > { %v425_v21 = vmul.f32 0.7, %v402_v15  ;;  %v323_v23 = vadd.f32 %v322_v1, %v281_v22  ;;  %v328_v36 = vpop.f32.mrf.mxu1 }
  0xba   : > { %478 = vadd.xlane.f32.xlu0 %v477_v19  ;;  %v410_v43 = vpop.f32.mrf.mxu3 }
  0xbb   : > { %v447_v24 = vadd.f32 %v875_v4, %v425_v21  ;;  %v426_v25 = vmul.f32 0.7, %v323_v23 }
  0xbd   : > { %v463_v20 = vmul.f32 %v447_v24, %v753_v32  ;;  %v448_v31 = vadd.f32 %v873_v0, %v426_v25 }
  0xbe   : > { %v363_v28 = vpop.f32.mrf.mxu2 }
  0xbf   : > { %v405_v29 = vadd.f32 %v404_v9, %v363_v28  ;;  %v480_v30 = vsel %vm233_vm0, %v463_v20, 0.0  ;;  %v464_v40 = vmul.f32 %v448_v31, %v814_v47 }
  0xc0   : > { %v481_v33 = vadd.f32 %v480_v30, %v462_v26  ;;  %v284_v35 = vpop.f32.mrf.mxu0 }
  0xc1   : > { %v427_v34 = vmul.f32 0.7, %v405_v29  ;;  %v326_v37 = vadd.f32 %v325_v17, %v284_v35  ;;  %v331_v63 = vpop.f32.mrf.mxu1 }
  0xc2   : > { %482 = vadd.xlane.f32.xlu0 %v481_v33  ;;  %v413_v8 = vpop.f32.mrf.mxu3 }
  0xc3   : > { %v449_v38 = vadd.f32 %v875_v4, %v427_v34  ;;  %v428_v39 = vmul.f32 0.7, %v326_v37 }
  0xc5   : > { %v465_v42 = vmul.f32 %v449_v38, %v784_v41  ;;  %v450_v57 = vadd.f32 %v873_v0, %v428_v39 }
  0xc6   : > { %v366_v32 = vpop.f32.mrf.mxu2 }
  0xc7   : > { %v408_v45 = vadd.f32 %v407_v27, %v366_v32  ;;  %v484_v56 = vsel %vm233_vm0, %v465_v42, 0.0  ;;  %v466_v47 = vmul.f32 %v450_v57, %v826_v49 }
  0xc8   : > { %v485_v58 = vadd.f32 %v484_v56, %v464_v40  ;;  %v287_v60 = vpop.f32.mrf.mxu0 }
  0xc9   : > { %v429_v59 = vmul.f32 0.7, %v408_v45  ;;  %v329_v61 = vadd.f32 %v328_v36, %v287_v60 }
  0xca   : > { %486 = vadd.xlane.f32.xlu1 %v485_v58  ;;  %v416_v23 = vpop.f32.mrf.mxu3 }
  0xcb   : > { %v451_v62 = vadd.f32 %v875_v4, %v429_v59  ;;  %v430_v1 = vmul.f32 0.7, %v329_v61 }
  0xcd   : > { %v467_v41 = vmul.f32 %v451_v62, %v799_v44  ;;  %v452_v6 = vadd.f32 %v873_v0, %v430_v1  ;;  %v334_v44 = vpop.f32.mrf.mxu1 }
  0xce   : > { %v369_v2 = vpop.f32.mrf.mxu2 }
  0xcf   : > { %v411_v3 = vadd.f32 %v410_v43, %v369_v2  ;;  %v488_v5 = vsel %vm233_vm0, %v467_v41, 0.0  ;;  %v468_v14 = vmul.f32 %v452_v6, %v838_v51 }
  0xd0   : > { %v489_v7 = vadd.f32 %v488_v5, %v466_v47  ;;  %v290_v10 = vpop.f32.mrf.mxu0 }
  0xd1   : > { %v431_v9 = vmul.f32 0.7, %v411_v3  ;;  %v332_v11 = vadd.f32 %v331_v63, %v290_v10 }
  0xd2   : > { %490 = vadd.xlane.f32.xlu1 %v489_v7  ;;  %v419_v37 = vpop.f32.mrf.mxu3 }
  0xd3   : > { %v453_v12 = vadd.f32 %v875_v4, %v431_v9  ;;  %v432_v13 = vmul.f32 0.7, %v332_v11 }
  0xd5   : > { %v469_v49 = vmul.f32 %v453_v12, %v811_v46  ;;  %v454_v18 = vadd.f32 %v873_v0, %v432_v13  ;;  %v337_v29 = vpop.f32.mrf.mxu1 }
  0xd6   : > { %v372_v15 = vpop.f32.mrf.mxu2 }
  0xd7   : > { %v414_v16 = vadd.f32 %v413_v8, %v372_v15  ;;  %v492_v17 = vsel %vm233_vm0, %v469_v49, 0.0  ;;  %v470_v51 = vmul.f32 %v454_v18, %v850_v53 }
  0xd8   : > { %v493_v19 = vadd.f32 %v492_v17, %v468_v14  ;;  %v293_v22 = vpop.f32.mrf.mxu0 }
  0xd9   : > { %v433_v21 = vmul.f32 0.7, %v414_v16  ;;  %v335_v24 = vadd.f32 %v334_v44, %v293_v22 }
  0xda   : > { %494 = vadd.xlane.f32.xlu2 %v493_v19 }
  0xdb   : > { %v455_v25 = vadd.f32 %v875_v4, %v433_v21  ;;  %v434_v26 = vmul.f32 0.7, %v335_v24 }
  0xdd   : > { %v471_v46 = vmul.f32 %v455_v25, %v823_v48  ;;  %v456_v30 = vadd.f32 %v873_v0, %v434_v26 }
  0xde   : > { %v375_v27 = vpop.f32.mrf.mxu2 }
  0xdf   : > { %v417_v20 = vadd.f32 %v416_v23, %v375_v27  ;;  %v496_v28 = vsel %vm233_vm0, %v471_v46, 0.0  ;;  %v472_v53 = vmul.f32 %v456_v30, %v859_v54 }
  0xe0   : > { %v497_v31 = vadd.f32 %v496_v28, %v470_v51  ;;  %v296_v34 = vpop.f32.mrf.mxu0 }
  0xe1   : > { %v435_v33 = vmul.f32 0.7, %v417_v20  ;;  %v338_v35 = vadd.f32 %v337_v29, %v296_v34 }
  0xe2   : > { %498 = vadd.xlane.f32.xlu2 %v497_v31 }
  0xe3   : > { %v457_v36 = vadd.f32 %v875_v4, %v435_v33  ;;  %v436_v38 = vmul.f32 0.7, %v338_v35 }
  0xe5   : > { %v473_v48 = vmul.f32 %v457_v36, %v835_v50  ;;  %v458_v32 = vadd.f32 %v873_v0, %v436_v38 }
  0xe6   : > { %v378_v39 = vpop.f32.mrf.mxu2 }
  0xe7   : > { %v420_v40 = vadd.f32 %v419_v37, %v378_v39  ;;  %v500_v42 = vsel %vm233_vm0, %v473_v48, 0.0  ;;  %v474_v57 = vmul.f32 %v458_v32, %v866_v55 }
  0xe8   : > { %v501_v43 = vadd.f32 %v500_v42, %v472_v53 }
  0xe9   : > { %v437_v45 = vmul.f32 0.7, %v420_v40 }
  0xea   : > { %502 = vadd.xlane.f32.xlu0 %v501_v43 }
  0xeb   : > { %v459_v56 = vadd.f32 %v875_v4, %v437_v45 }
  0xed   : > { %v475_v58 = vmul.f32 %v459_v56, %v847_v52 }
  0xef   : > { %v504_v59 = vsel %vm233_vm0, %v475_v58, 0.0 }
  0xf0   : > { %v505_v54 = vadd.f32 %v504_v59, %v474_v57 }
  0xf2   : > { %506 = vadd.xlane.f32.xlu1 %v505_v54 }
 0x12d   : > { %v479_v50 = vpop.xlane.xlu0 %478 }
 0x12e   : > { %509 = vst.msk [vmem:[%s175_s30] sm:$0xff] %vm508_vm1, %v479_v50 }
 0x135   : > { %v483_v0 = vpop.xlane.xlu0 %482 }
 0x136   : > { %510 = vst.msk [vmem:[%s175_s30 + $0x8] sm:$0xff] %vm508_vm1, %v483_v0 }
 0x13d   : > { %v487_v4 = vpop.xlane.xlu1 %486 }
 0x13e   : > { %511 = vst.msk [vmem:[%s175_s30 + $0x10] sm:$0xff] %vm508_vm1, %v487_v4 }
 0x145   : > { %v491_v52 = vpop.xlane.xlu1 %490 }
 0x146   : > { %512 = vst.msk [vmem:[%s175_s30 + $0x18] sm:$0xff] %vm508_vm1, %v491_v52 }
 0x14d   : > { %v495_v55 = vpop.xlane.xlu2 %494 }
 0x14e   : > { %513 = vst.msk [vmem:[%s175_s30 + $0x20] sm:$0xff] %vm508_vm1, %v495_v55 }
 0x155   : > { %v499_v60 = vpop.xlane.xlu2 %498 }
 0x156   : > { %514 = vst.msk [vmem:[%s175_s30 + $0x28] sm:$0xff] %vm508_vm1, %v499_v60 }
 0x15d   : > { %v503_v61 = vpop.xlane.xlu0 %502 }
 0x15e   : > { %515 = vst.msk [vmem:[%s175_s30 + $0x30] sm:$0xff] %vm508_vm1, %v503_v61 }
 0x165   : > { %v507_v62 = vpop.xlane.xlu1 %506 }
 0x166   : > { %516 = vst.msk [vmem:[%s175_s30 + $0x38] sm:$0xff] %vm508_vm1, %v507_v62 }
 0x167 PF: > { %s13_s12 = sadd.s32 1, %s616_s12  }
 0x168   : > { %p10_p4 = scmp.ge.s32.totalorder %s13_s12, 6  }
 0x16a   :  { %12 = sbr.rel (!%p10_p4) target bundleno = 1 (0x1), region = 62 }

</bundles_post_ra>
